<compile_context>
chip_gen: v5e
topology: v5e:2x2
jax: 0.10.0
libtpu: 0.0.40
codegen_flags: <defaults>
</compile_context>

<pallas_src>
import jax
import jax.numpy as jnp
import numpy as np
from jax.experimental import pallas as pl
from jax.experimental.pallas import tpu as pltpu

_LANE = 128
_SUBLANE = 8
_MIN_GRID_STEPS = 4            # minimum pipeline depth for non-tiny inputs
_MULTISTEP_BYTES = 1 << 20     # enforce the minimum only above ~1 MiB


def _cdiv(a, b):
    return -(-a // b)


def _round_down(v, m):
    return (v // m) * m


def _vmem_budget_and_limit():
    """Per-generation (block budget bytes, explicit scoped VMEM limit bytes).

    Budget accounts for 2x double-buffered input blocks + 2x output blocks,
    i.e. each x/out block gets budget/4 bytes.
    """
    vmem_phys = 128 * 1024 * 1024
    try:
        info = pltpu.get_tpu_info()
        vmem_phys = int(getattr(info, "vmem_capacity_bytes", vmem_phys))
    except Exception:
        pass
    if vmem_phys <= 64 * 1024 * 1024:
        # v7x-class: 64 MiB physical per TensorCore -> ~6 MiB blocks, headroom kept.
        return 24 * 1024 * 1024, 48 * 1024 * 1024
    # v5e / v6e: 128 MiB physical -> ~8 MiB blocks, explicit 64 MiB scoped limit.
    return 32 * 1024 * 1024, 64 * 1024 * 1024


def _drop_path_kernel(scale_ref, x_ref, o_ref):
    # scale_ref: (TR, 1) float32 per-row scale in {0, 1/keep_prob}
    # x_ref / o_ref: (TR, TC) tile of the row-flattened input
    o_ref[...] = (x_ref[...].astype(jnp.float32) * scale_ref[...]).astype(o_ref.dtype)


def drop_path_pallas(x, key=None, drop_prob: float = 0.0, training: bool = False):
    """Equivalent of torch drop_path(x, drop_prob, training)."""
    if drop_prob == 0.0 or not training:
        return x
    if not (0.0 < drop_prob < 1.0):
        # torch would silently produce NaN for drop_prob == 1.0; guard instead.
        raise ValueError(f"drop_prob must be in [0, 1), got {drop_prob}")
    if key is None:
        raise ValueError("a PRNG key is required when training with drop_prob > 0")

    keep_prob = 1.0 - drop_prob
    B = x.shape[0]
    F = int(np.prod(x.shape[1:])) if x.ndim > 1 else 1

    # Per-sample keep decision, precomputed once in float32:
    #   scale = floor(keep_prob + U) / keep_prob
    rand = jax.random.uniform(key, (B, 1), dtype=jnp.float32)
    scale = jnp.floor(keep_prob + rand) * (1.0 / keep_prob)  # (B, 1) f32

    itemsize = x.dtype.itemsize
    budget_bytes, vmem_limit = _vmem_budget_and_limit()
    max_block_elems = max(budget_bytes // (4 * itemsize), _SUBLANE * _LANE)

    # ---- choose a 2-D (rows, cols) view with lane-dense columns -------------
    x2 = x.reshape(B, F)
    pad = (_LANE - F) if F < _LANE else 0
    if pad:
        # Avoid sub-128-lane (fully masked) stores: pad once, slice at the end.
        x2 = jnp.pad(x2, ((0, 0), (0, pad)))
    Fp = F + pad

    if Fp % _LANE == 0:
        # Flatten features into rows of width L (multiple of 128 dividing Fp)
        # so sublanes stay full even for tiny batches.
        L = next(c for c in (2048, 1024, 512, 256, _LANE) if Fp % c == 0)
        rps = Fp // L
        rows, cols = B * rps, L
        x2 = x2.reshape(rows, cols)
        scale2 = jnp.repeat(scale, rps, axis=0) if rps > 1 else scale
    else:
        # F >= 128 but not a multiple of 128: keep (B, F); only the last
        # column tile is a masked ragged edge.
        rows, cols = B, Fp
        scale2 = scale

    # ---- column (lane) tile: multiple of 128, or the full minor dim ---------
    if cols <= _LANE:
        tc = cols
    else:
        # Budget-driven jointly with the row tile: when rows is shallow, give
        # the columns (almost) the whole per-block budget.
        min_rows_in_block = min(rows, _SUBLANE)
        tc_budget = _round_down(max_block_elems // min_rows_in_block, _LANE)
        tc = max(_LANE, min(tc_budget, _round_down(cols, _LANE)))
        if cols % _LANE == 0 and tc >= cols:
            tc = cols

    # ---- row (sublane) tile: largest multiple of 8 fitting the budget -------
    tr = max_block_elems // max(tc, 1)
    if tr >= rows:
        tr = rows  # full dim always satisfies the (8, 128) tiling rule
    else:
        tr = max(_SUBLANE, _round_down(min(tr, rows), _SUBLANE))

    # ---- enforce a minimum grid depth for pipelining / megacore sharding ----
    total_bytes = rows * cols * itemsize
    if total_bytes > _MULTISTEP_BYTES:
        while (_cdiv(rows, tr) * _cdiv(cols, tc) < _MIN_GRID_STEPS
               and (tr > _SUBLANE or tc > _LANE)):
            if tr > _SUBLANE:
                tr = max(_SUBLANE, _round_down(_cdiv(tr, 2), _SUBLANE))
            else:
                tc = max(_LANE, _round_down(_cdiv(tc, 2), _LANE))

    grid = (_cdiv(rows, tr), _cdiv(cols, tc))  # ragged edges are masked

    out = pl.pallas_call(
        _drop_path_kernel,
        out_shape=jax.ShapeDtypeStruct((rows, cols), x.dtype),
        grid_spec=pltpu.PrefetchScalarGridSpec(
            num_scalar_prefetch=0,
            grid=grid,
            in_specs=[
                # per-row scale: same block across the column axis -> no re-DMA
                pl.BlockSpec((tr, 1), lambda i, j: (i, 0)),
                pl.BlockSpec((tr, tc), lambda i, j: (i, j)),
            ],
            out_specs=pl.BlockSpec((tr, tc), lambda i, j: (i, j)),
        ),
        # x2 is consumed by this call only; alias it to the output so a large
        # training activation does not occupy two HBM buffers at once.
        input_output_aliases={1: 0},
        compiler_params=pltpu.CompilerParams(
            dimension_semantics=("parallel", "parallel"),
            vmem_limit_bytes=vmem_limit,
        ),
    )(scale2, x2)

    out2 = out.reshape(B, Fp)
    if pad:
        out2 = out2[:, :F]
    return out2.reshape(x.shape)


class DropPath:
    """JAX/Pallas counterpart of the PyTorch DropPath module."""

    def __init__(self, drop_prob=None):
        self.drop_prob = drop_prob
        self.training = True

    def __call__(self, x, key=None):
        p = 0.0 if self.drop_prob is None else float(self.drop_prob)
        return drop_path_pallas(x, key, p, self.training)


if __name__ == "__main__":
    root = jax.random.PRNGKey(0)
    kx, kmask = jax.random.split(root)

    drop_prob = 0.25
    keep_prob = 1.0 - drop_prob

    # primary shape: NCHW batch=2, channels=4, spatial 16x16 (F=1024, lane-dense path)
    x = jax.random.normal(kx, (2, 4, 16, 16), dtype=jnp.float32)

    # pure-JAX reference of the torch semantics (captured before the kernel runs)
    rand = jax.random.uniform(kmask, (x.shape[0], 1), dtype=jnp.float32)
    mask = jnp.floor(keep_prob + rand).reshape(x.shape[0], 1, 1, 1)
    ref = np.asarray(x / keep_prob * mask)
    x_np = np.asarray(x)

    module = DropPath(drop_prob=drop_prob)
    module.training = True
    y = jax.block_until_ready(module(x, kmask))
    np.testing.assert_allclose(np.asarray(y), ref, rtol=1e-5, atol=1e-6)

    # eval mode: identity (no key required)
    module.training = False
    y_eval = jax.block_until_ready(module(x))
    np.testing.assert_allclose(np.asarray(y_eval), x_np)
    module.training = True

    # secondary shapes exercising the padded (<128 features) and ragged
    # (>=128, non-multiple-of-128) paths
    for idx, shape in enumerate([(2, 5, 7), (3, 150)]):
        kx2, km2 = jax.random.split(jax.random.fold_in(root, idx + 1))
        xs = jax.random.normal(kx2, shape, dtype=jnp.float32)
        rnd = jax.random.uniform(km2, (shape[0], 1), dtype=jnp.float32)
        msk = jnp.floor(keep_prob + rnd).reshape((shape[0],) + (1,) * (len(shape) - 1))
        ref_s = np.asarray(xs / keep_prob * msk)
        ys = jax.block_until_ready(drop_path_pallas(xs, km2, drop_prob, True))
        np.testing.assert_allclose(np.asarray(ys), ref_s, rtol=1e-5, atol=1e-6)

    print("KERNEL_OK")
</pallas_src>

<mosaic_0001>
module attributes {stable_mosaic.version = 11 : i64} {
  func.func @_drop_path_kernel(%arg0: i32, %arg1: i32, %arg2: memref<2x1xf32, #tpu.memory_space<vmem>>, %arg3: memref<2x1024xf32, #tpu.memory_space<vmem>>, %arg4: memref<2x1024xf32, #tpu.memory_space<vmem>>) attributes {dimension_semantics = [#tpu.dimension_semantics<parallel>, #tpu.dimension_semantics<parallel>], iteration_bounds = array<i64: 1, 1>, scalar_prefetch = 0 : i64, scratch_operands = 0 : i64, tpu.core_type = #tpu.core_type<tc>, window_params = [{transform_indices = @transform_0, window_bounds = array<i64: 2, 1>}, {transform_indices = @transform_1, window_bounds = array<i64: 2, 1024>}, {transform_indices = @transform_2, window_bounds = array<i64: 2, 1024>}]} {
    %c0 = arith.constant 0 : index
    %c0_0 = arith.constant 0 : index
    %0 = vector.load %arg3[%c0, %c0_0] : memref<2x1024xf32, #tpu.memory_space<vmem>>, vector<2x1024xf32>
    %c0_1 = arith.constant 0 : index
    %c0_2 = arith.constant 0 : index
    %1 = vector.load %arg2[%c0_1, %c0_2] : memref<2x1xf32, #tpu.memory_space<vmem>>, vector<2x1xf32>
    %2 = vector.broadcast %1 : vector<2x1xf32> to vector<2x1024xf32>
    %3 = arith.mulf %0, %2 : vector<2x1024xf32>
    %c0_3 = arith.constant 0 : index
    %c0_4 = arith.constant 0 : index
    %4 = vector.load %arg4[%c0_3, %c0_4] : memref<2x1024xf32, #tpu.memory_space<vmem>>, vector<2x1024xf32>
    tpu.vector_store %arg4[%c0_3, %c0_4], %3 {strides = array<i32>} : memref<2x1024xf32, #tpu.memory_space<vmem>>, vector<2x1024xf32>,
    return
  }
  func.func @transform_0(%arg0: i32, %arg1: i32) -> (i32, i32) {
    %c0_i32 = arith.constant 0 : i32
    %c0_i32_0 = arith.constant 0 : i32
    return %arg0, %c0_i32 : i32, i32
  }
  func.func @transform_1(%arg0: i32, %arg1: i32) -> (i32, i32) {
    %c0_i32 = arith.constant 0 : i32
    return %arg0, %arg1 : i32, i32
  }
  func.func @transform_2(%arg0: i32, %arg1: i32) -> (i32, i32) {
    %c0_i32 = arith.constant 0 : i32
    return %arg0, %arg1 : i32, i32
  }
}

</mosaic_0001>

<bundles_post_ra>
// kernel: tpu_custom_call.1
= control target key start
LH: loop header
LB: loop body
LE: loop exit
PB: predicated region body
PF: predicated region fallthrough
CT: control target
= control target key end

     0   :  { %7 = vsyncpa [#allocation3], 0  ;;  %s144_s0 = inlined_call_operand.vmem [shape: f32[2,1], index: 0, kind: input, shape index: {}]   ;;  %s145_s1 = inlined_call_operand.hbm [shape: f32[2,1024], index: 1, kind: input, shape index: {}, may-alias: {1,2}]   ;;  %s146_s2 = inlined_call_operand.hbm [shape: f32[2,1024], index: 2, kind: output, shape index: {}, may-alias: {1,2}]  }
   0x1   :  { %8 = vsyncpa [#allocation4], 0  ;;  %s16_s11 = sshll.u32 %s145_s1, 4  ;;  %s116_s12 = smov [#allocation2]   ;;  %s17_s11 = int_to_ptr.hbm [resolvable:$true] %s16_s11 }
   0x2   :  { %s18_s13 = sshll.u32 %s116_s12, 4  ;;  %s19_s13 = int_to_ptr.vmem [resolvable:$true] %s18_s13 }
   0x3   :  { %21 = dma.hbm_to_vmem [thread:$0]  %s17_s11, 256, %s19_s13, [#allocation3]  }
   0x4   :  { %112 = dma.done.wait [#allocation3], 256  }
   0x5   :  { %113 = vsyncadd [#allocation3], 4294967040  ;;  %v117_v0 = vmov 0   ;;  %v28_v1 = vld [vmem:[%s144_s0] sm:$0x3]  ;;  %v27_v7 = vld [vmem:[#allocation2 + $0x8] sm:$0xff] }
   0x6   :  { %63 = vset.pattern.permute.xlu0 %v117_v0  ;;  %v118_v2 = vmov 269488144   ;;  %v26_v6 = vld [vmem:[#allocation2] sm:$0xff]  ;;  %s119_s1 = smov [#allocation5]   ;;  %s49_s19 = sshll.u32 %s146_s2, 4  ;;  %s50_s19 = int_to_ptr.hbm [resolvable:$true] %s49_s19 }
   0x7   :  { %31 = vperm.xlu0 %63, %v28_v1   ;;  %v34_v3 = vunpack.c.l.s4 %v118_v2  ;;  %s47_s16 = sshll.u32 %s119_s1, 4  ;;  %s48_s16 = int_to_ptr.vmem [resolvable:$true] %s47_s16 }
   0x9   :  { %v35_v4 = vunpack.c.0.s8 %v34_v3 }
  0x79   :  { %v32_v5 = vpop.permute.xlu0 %31 }
  0x7a   :  { %v36_v8 = vperm.slane %v32_v5, %v35_v4 }
  0x7c   :  { %v38_v9 = vmul.f32 %v36_v8, %v26_v6  ;;  %v39_v10 = vmul.f32 %v36_v8, %v27_v7 }
  0x7e   :  { %40 = vst [vmem:[#allocation5] sm:$0xff] %v38_v9 }
  0x7f   :  { %41 = vst [vmem:[#allocation5 + $0x8] sm:$0xff] %v39_v10 }
  0x80   :  { %52 = dma.vmem_to_hbm [thread:$0]  %s48_s16, 256, %s50_s19, [#allocation4]  }
  0x81   :  { %114 = dma.done.wait [#allocation4], 256  }
  0x82   :  { %115 = vsyncadd [#allocation4], 4294967040 }
  0x83   :  { %57 = vsyncpa [#allocation3], 1 }
  0x84   :  { %58 = vsyncpa [#allocation4], 1 }

</bundles_post_ra>
